<compile_context>
chip_gen: v7x
topology: tpu7x:2x2x1
jax: 0.10.0
libtpu: 0.0.40
codegen_flags: <defaults>
</compile_context>

<pallas_src>
from functools import partial

import jax
import jax.numpy as jnp
from jax import lax
from jax.experimental import pallas as pl
from jax.experimental.pallas import tpu as pltpu

ALPHA = 0.2                      # LeakyReLU negative slope
CONCAT = True
NEG_BIG = -9000000000000000.0    # matches the torch constant; a fully masked row
                                 # yields uniform attention (same as torch).


def _round_up(v, m):
    return ((v + m - 1) // m) * m


def _gat_fused_kernel(x_ref, w_ref, sup_ref, rs_ref, cs_ref, out_ref, *,
                      n, tm, alpha, concat, th0, th1, use_bf16):
    """One row block [i0, i0+tm) of the GAT layer, fully fused."""
    # ---- attention scores, faithful to torch's cat(dim=0) a_input -----------
    row0 = pl.program_id(0) * tm
    gi = row0 + lax.broadcasted_iota(jnp.int32, (tm, n), 0)   # global row index
    cj = lax.broadcasted_iota(jnp.int32, (tm, n), 1)          # column index
    f = gi * n + cj                                           # flat (i, j) index

    colbit0 = (2 * cj) >= n
    colbit1 = (2 * cj + 1) >= n

    s1_even = rs_ref[:, 0:1]      # s1[(2i)   % N]   (row-wise, (tm, 1))
    s1_odd = rs_ref[:, 1:2]       # s1[(2i+1) % N]
    s2_even = rs_ref[:, 2:3]      # s2[(2i)   % N]
    s2_odd = rs_ref[:, 3:4]       # s2[(2i+1) % N]
    c_s1 = cs_ref[0:1, :]         # s1[(2j)   % N]   (column-wise, (1, n))
    c_s2 = cs_ref[1:2, :]         # s2[(2j+1) % N]

    # e[i,j] = s1[g(2f)] + s2[g(2f+1)];  g(r) = r//N if r < N^2 else r % N.
    term0 = jnp.where(f < th0, jnp.where(colbit0, s1_odd, s1_even), c_s1)
    term1 = jnp.where(f < th1, jnp.where(colbit1, s2_odd, s2_even), c_s2)
    scores = term0 + term1

    # LeakyReLU + adjacency mask (all f32, VPU work).
    e = jnp.where(scores > 0, scores, alpha * scores)
    masked = jnp.where(sup_ref[...] > 0, e, NEG_BIG)

    # Row softmax: stats in f32; normalization folded into the epilogue below.
    m = jnp.max(masked, axis=1, keepdims=True)
    p = jnp.exp(masked - m)
    denom = jnp.sum(p, axis=1, keepdims=True)
    r = pl.reciprocal(denom, approx=True)     # EUP slot (otherwise idle here)
    r = r * (2.0 - denom * r)                 # one Newton step -> ~f32 accuracy

    # h = x @ W (W pre-padded to a lane-dense width; bf16 operands when enabled,
    # f32 accumulation).  Recomputed per row block so the grid axis can stay
    # "parallel" (scratch is per-core on v7x megacore).
    h = jnp.dot(x_ref[...], w_ref[...], preferred_element_type=jnp.float32)

    # Aggregation: (attn @ h); the 1/denom scaling is applied to the small
    # (tm, F_pad) result instead of the (tm, N) attention matrix.
    if use_bf16:
        agg = jnp.dot(p.astype(jnp.bfloat16), h.astype(jnp.bfloat16),
                      preferred_element_type=jnp.float32)
    else:
        agg = jnp.dot(p, h, preferred_element_type=jnp.float32)
    h_out = agg * r

    if concat:
        # ELU.  exp() is only evaluated on the clamped (<= 0) branch so it can
        # never produce inf; the expm1-vs-(exp-1) delta near 0 is < 1e-7 in f32.
        h_out = jnp.where(h_out > 0, h_out,
                          jnp.exp(jnp.minimum(h_out, 0.0)) - 1.0)
    out_ref[...] = h_out


def graph_attention_forward(x, support, W, a, *, alpha=ALPHA, concat=CONCAT,
                            row_block=None, use_bf16=False):
    """GAT layer forward: returns (N, out_feat) float32, matching the torch module."""
    x = jnp.asarray(x, jnp.float32)
    support = jnp.asarray(support, jnp.float32)
    W = jnp.asarray(W, jnp.float32)
    a = jnp.asarray(a, jnp.float32)

    n, in_feat = x.shape
    out_feat = W.shape[1]
    f_pad = _round_up(out_feat, 128)       # lane-dense h / h_out / stores
    assert n * n < 2 ** 31, "flat pair index is computed in int32 inside the kernel"

    # ---- tiny wrapper-side precompute: O(N * in_feat) flops, O(N) bytes ------
    # s1 = h @ a[:F] = x @ (W @ a[:F]),  s2 = x @ (W @ a[F:]).  No O(N^2) or
    # O(N^2 * F) intermediate is ever built outside the kernel.
    s1 = (x @ (W @ a[:out_feat, :]))[:, 0]         # (N,)
    s2 = (x @ (W @ a[out_feat:, :]))[:, 0]         # (N,)
    idx = jnp.arange(n)
    rs = jnp.stack([s1[(2 * idx) % n], s1[(2 * idx + 1) % n],
                    s2[(2 * idx) % n], s2[(2 * idx + 1) % n]], axis=1)   # (N, 4)
    cs = jnp.stack([s1[(2 * idx) % n], s2[(2 * idx + 1) % n]], axis=0)   # (2, N)

    # Zero-pad W's output dim so the output store is a full-lane (>=128) vst.
    Wp = jnp.zeros((in_feat, f_pad), jnp.float32).at[:, :out_feat].set(W)

    if use_bf16:   # bf16 MXU operands (v6e / v7x); halves x/W HBM+VMEM bytes too.
        x_in, w_in = x.astype(jnp.bfloat16), Wp.astype(jnp.bfloat16)
    else:
        x_in, w_in = x, Wp

    # ---- row tiling ----------------------------------------------------------
    if row_block is None:
        # 128 fits v7x's 64 MiB VMEM comfortably; v5e/v6e can pass row_block=256.
        tm = n if n <= 256 else 128
    else:
        tm = min(int(row_block), n)
    if tm != n:
        assert tm % 8 == 0, "row_block must be a multiple of 8 (sublane tiling)"
    grid = (pl.cdiv(n, tm),)

    th0 = (n * n + 1) // 2      # 2*f     < N^2  <=>  f < th0
    th1 = (n * n) // 2          # 2*f + 1 < N^2  <=>  f < th1

    kern = partial(_gat_fused_kernel, n=n, tm=tm, alpha=float(alpha),
                   concat=bool(concat), th0=th0, th1=th1, use_bf16=bool(use_bf16))

    # Rough per-step VMEM footprint (double-buffered inputs + temporaries).
    esz = 2 if use_bf16 else 4
    vmem_est = (2 * (x_in.size * esz + w_in.size * esz
                     + tm * n * 4 + tm * 4 * 4 + 2 * n * 4 + tm * f_pad * 4)
                + 6 * tm * n * 4 + n * f_pad * 4)
    vmem_limit = int(min(64 * 1024 * 1024, max(32 * 1024 * 1024, 2 * vmem_est)))

    out_padded = pl.pallas_call(
        kern,
        out_shape=jax.ShapeDtypeStruct((n, f_pad), jnp.float32),
        grid=grid,
        in_specs=[
            pl.BlockSpec((n, in_feat), lambda i: (0, 0)),       # x   (VMEM resident)
            pl.BlockSpec((in_feat, f_pad), lambda i: (0, 0)),   # W   (VMEM resident)
            pl.BlockSpec((tm, n), lambda i: (i, 0)),            # support row block
            pl.BlockSpec((tm, 4), lambda i: (i, 0)),            # row-wise score vecs
            pl.BlockSpec((2, n), lambda i: (0, 0)),             # col-wise score vecs
        ],
        out_specs=pl.BlockSpec((tm, f_pad), lambda i: (i, 0)),
        compiler_params=pltpu.CompilerParams(
            dimension_semantics=("parallel",),    # row blocks across TCs (v7x)
            vmem_limit_bytes=vmem_limit),
    )(x_in, w_in, support, rs, cs)

    return out_padded[:, :out_feat]


def _reference(x, support, W, a, alpha=ALPHA, concat=CONCAT):
    """Direct transcription of the torch module (cat on dim 0, as written)."""
    h = x @ W
    N, F = h.shape
    A = jnp.tile(h, (1, N)).reshape(N * N, F)      # h.repeat(1, N).view(N*N, -1)
    B = jnp.tile(h, (N, 1))                        # h.repeat(N, 1)
    a_input = jnp.concatenate([A, B], axis=0).reshape(N, N, 2 * F)
    e = (a_input @ a)[..., 0]
    e = jnp.where(e > 0, e, alpha * e)             # LeakyReLU
    masked = jnp.where(support > 0, e, NEG_BIG)
    attn = jax.nn.softmax(masked, axis=1)
    h_out = attn @ h
    return jax.nn.elu(h_out) if concat else h_out


if __name__ == "__main__":
    key = jax.random.PRNGKey(0)
    in_feat, out_feat = 16, 8

    def make_inputs(k, n):
        k1, k2, k3, k4 = jax.random.split(k, 4)
        gain = 1.414
        bw = gain * (6.0 / (in_feat + out_feat)) ** 0.5
        W = jax.random.uniform(k1, (in_feat, out_feat), jnp.float32, -bw, bw)
        ba = gain * (6.0 / (1 + 2 * out_feat)) ** 0.5
        a = jax.random.uniform(k2, (2 * out_feat, 1), jnp.float32, -ba, ba)
        x = jax.random.normal(k3, (n, in_feat), jnp.float32)
        adj = (jax.random.uniform(k4, (n, n)) > 0.5).astype(jnp.float32)
        support = jnp.maximum(adj, jnp.eye(n, dtype=jnp.float32))  # self-loops
        return x, support, W, a

    cases = [
        dict(n=8,  concat=True,  row_block=None, use_bf16=False, tol=1e-3),
        dict(n=16, concat=False, row_block=8,    use_bf16=False, tol=1e-3),  # 2 row blocks
        dict(n=9,  concat=True,  row_block=None, use_bf16=False, tol=1e-3),  # odd N (cat-dim-0 straddle row)
        dict(n=16, concat=True,  row_block=8,    use_bf16=True,  tol=5e-2),  # bf16 MXU path
    ]
    for i, c in enumerate(cases):
        x, support, W, a = make_inputs(jax.random.fold_in(key, i), c["n"])
        out = graph_attention_forward(x, support, W, a, concat=c["concat"],
                                      row_block=c["row_block"],
                                      use_bf16=c["use_bf16"])
        out = jax.block_until_ready(out)
        ref = _reference(x, support, W, a, concat=c["concat"])
        assert out.shape == (c["n"], out_feat)
        assert bool(jnp.all(jnp.isfinite(out)))
        assert jnp.allclose(out, ref, atol=c["tol"], rtol=c["tol"]), \
            f"case {i}: mismatch vs torch-faithful reference"

    print("KERNEL_OK")
</pallas_src>

<mosaic_0001>
module attributes {stable_mosaic.version = 11 : i64} {
  func.func @_gat_fused_kernel(%arg0: i32, %arg1: memref<8x16xf32, #tpu.memory_space<vmem>>, %arg2: memref<16x128xf32, #tpu.memory_space<vmem>>, %arg3: memref<8x8xf32, #tpu.memory_space<vmem>>, %arg4: memref<8x4xf32, #tpu.memory_space<vmem>>, %arg5: memref<2x8xf32, #tpu.memory_space<vmem>>, %arg6: memref<8x128xf32, #tpu.memory_space<vmem>>) attributes {dimension_semantics = [#tpu.dimension_semantics<parallel>], iteration_bounds = array<i64: 1>, scalar_prefetch = 0 : i64, scratch_operands = 0 : i64, tpu.core_type = #tpu.core_type<tc>, window_params = [{pipeline_mode = #tpu.pipeline_mode<synchronous>, transform_indices = @transform_0, window_bounds = array<i64: 8, 16>}, {pipeline_mode = #tpu.pipeline_mode<synchronous>, transform_indices = @transform_1, window_bounds = array<i64: 16, 128>}, {transform_indices = @transform_2, window_bounds = array<i64: 8, 8>}, {transform_indices = @transform_3, window_bounds = array<i64: 8, 4>}, {pipeline_mode = #tpu.pipeline_mode<synchronous>, transform_indices = @transform_4, window_bounds = array<i64: 2, 8>}, {transform_indices = @transform_5, window_bounds = array<i64: 8, 128>}]} {
    %c8_i32 = arith.constant 8 : i32
    %0 = arith.muli %arg0, %c8_i32 : i32
    %1 = tpu.iota {dimensions = array<i32: 0>} : vector<8x8xi32>
    %2 = vector.broadcast %0 : i32 to vector<8x8xi32>
    %3 = arith.addi %2, %1 : vector<8x8xi32>
    %4 = tpu.iota {dimensions = array<i32: 1>} : vector<8x8xi32>
    %c8_i32_0 = arith.constant 8 : i32
    %5 = vector.broadcast %c8_i32_0 : i32 to vector<8x8xi32>
    %6 = arith.muli %3, %5 : vector<8x8xi32>
    %7 = arith.addi %6, %4 : vector<8x8xi32>
    %c2_i32 = arith.constant 2 : i32
    %8 = vector.broadcast %c2_i32 : i32 to vector<8x8xi32>
    %9 = arith.muli %8, %4 : vector<8x8xi32>
    %c8_i32_1 = arith.constant 8 : i32
    %10 = vector.broadcast %c8_i32_1 : i32 to vector<8x8xi32>
    %11 = arith.cmpi sge, %9, %10 : vector<8x8xi32>
    %c2_i32_2 = arith.constant 2 : i32
    %12 = vector.broadcast %c2_i32_2 : i32 to vector<8x8xi32>
    %13 = arith.muli %12, %4 : vector<8x8xi32>
    %c1_i32 = arith.constant 1 : i32
    %14 = vector.broadcast %c1_i32 : i32 to vector<8x8xi32>
    %15 = arith.addi %13, %14 : vector<8x8xi32>
    %c8_i32_3 = arith.constant 8 : i32
    %16 = vector.broadcast %c8_i32_3 : i32 to vector<8x8xi32>
    %17 = arith.cmpi sge, %15, %16 : vector<8x8xi32>
    %c0 = arith.constant 0 : index
    %c0_4 = arith.constant 0 : index
    %18 = vector.load %arg4[%c0, %c0_4] : memref<8x4xf32, #tpu.memory_space<vmem>>, vector<8x1xf32>
    %c0_5 = arith.constant 0 : index
    %c1 = arith.constant 1 : index
    %19 = vector.load %arg4[%c0_5, %c1] : memref<8x4xf32, #tpu.memory_space<vmem>>, vector<8x1xf32>
    %c0_6 = arith.constant 0 : index
    %c2 = arith.constant 2 : index
    %20 = vector.load %arg4[%c0_6, %c2] : memref<8x4xf32, #tpu.memory_space<vmem>>, vector<8x1xf32>
    %c0_7 = arith.constant 0 : index
    %c3 = arith.constant 3 : index
    %21 = vector.load %arg4[%c0_7, %c3] : memref<8x4xf32, #tpu.memory_space<vmem>>, vector<8x1xf32>
    %c0_8 = arith.constant 0 : index
    %c0_9 = arith.constant 0 : index
    %22 = vector.load %arg5[%c0_8, %c0_9] : memref<2x8xf32, #tpu.memory_space<vmem>>, vector<1x8xf32>
    %c1_10 = arith.constant 1 : index
    %c0_11 = arith.constant 0 : index
    %23 = vector.load %arg5[%c1_10, %c0_11] : memref<2x8xf32, #tpu.memory_space<vmem>>, vector<1x8xf32>
    %c32_i32 = arith.constant 32 : i32
    %24 = vector.broadcast %c32_i32 : i32 to vector<8x8xi32>
    %25 = arith.cmpi slt, %7, %24 : vector<8x8xi32>
    %26 = vector.shape_cast %19 : vector<8x1xf32> to vector<8x1xf32>
    %27 = vector.broadcast %26 : vector<8x1xf32> to vector<8x8xf32>
    %28 = vector.shape_cast %18 : vector<8x1xf32> to vector<8x1xf32>
    %29 = vector.broadcast %28 : vector<8x1xf32> to vector<8x8xf32>
    %30 = arith.select %11, %27, %29 : vector<8x8xi1>, vector<8x8xf32>
    %31 = vector.shape_cast %22 : vector<1x8xf32> to vector<1x8xf32>
    %32 = vector.broadcast %31 : vector<1x8xf32> to vector<8x8xf32>
    %33 = arith.select %25, %30, %32 : vector<8x8xi1>, vector<8x8xf32>
    %c32_i32_12 = arith.constant 32 : i32
    %34 = vector.broadcast %c32_i32_12 : i32 to vector<8x8xi32>
    %35 = arith.cmpi slt, %7, %34 : vector<8x8xi32>
    %36 = vector.shape_cast %21 : vector<8x1xf32> to vector<8x1xf32>
    %37 = vector.broadcast %36 : vector<8x1xf32> to vector<8x8xf32>
    %38 = vector.shape_cast %20 : vector<8x1xf32> to vector<8x1xf32>
    %39 = vector.broadcast %38 : vector<8x1xf32> to vector<8x8xf32>
    %40 = arith.select %17, %37, %39 : vector<8x8xi1>, vector<8x8xf32>
    %41 = vector.shape_cast %23 : vector<1x8xf32> to vector<1x8xf32>
    %42 = vector.broadcast %41 : vector<1x8xf32> to vector<8x8xf32>
    %43 = arith.select %35, %40, %42 : vector<8x8xi1>, vector<8x8xf32>
    %44 = arith.addf %33, %43 : vector<8x8xf32>
    %cst = arith.constant 0.000000e+00 : f32
    %45 = vector.broadcast %cst : f32 to vector<8x8xf32>
    %46 = arith.cmpf ogt, %44, %45 : vector<8x8xf32>
    %cst_13 = arith.constant 2.000000e-01 : f32
    %47 = vector.broadcast %cst_13 : f32 to vector<8x8xf32>
    %48 = arith.mulf %47, %44 : vector<8x8xf32>
    %49 = arith.select %46, %44, %48 : vector<8x8xi1>, vector<8x8xf32>
    %c0_14 = arith.constant 0 : index
    %c0_15 = arith.constant 0 : index
    %50 = vector.load %arg3[%c0_14, %c0_15] : memref<8x8xf32, #tpu.memory_space<vmem>>, vector<8x8xf32>
    %cst_16 = arith.constant 0.000000e+00 : f32
    %51 = vector.broadcast %cst_16 : f32 to vector<8x8xf32>
    %52 = arith.cmpf ogt, %50, %51 : vector<8x8xf32>
    %cst_17 = arith.constant -9.000000e+15 : f32
    %53 = vector.broadcast %cst_17 : f32 to vector<8x8xf32>
    %54 = arith.select %52, %49, %53 : vector<8x8xi1>, vector<8x8xf32>
    %cst_18 = arith.constant dense<0xFF800000> : vector<8xf32>
    %55 = vector.multi_reduction <maximumf>, %54, %cst_18 [1] : vector<8x8xf32> to vector<8xf32>
    %56 = vector.shape_cast %55 : vector<8xf32> to vector<8x1xf32>
    %57 = vector.broadcast %56 : vector<8x1xf32> to vector<8x8xf32>
    %58 = arith.subf %54, %57 : vector<8x8xf32>
    %59 = math.exp %58 : vector<8x8xf32>
    %cst_19 = arith.constant dense<0.000000e+00> : vector<8xf32>
    %60 = vector.multi_reduction <add>, %59, %cst_19 [1] : vector<8x8xf32> to vector<8xf32>
    %61 = vector.shape_cast %60 : vector<8xf32> to vector<8x1xf32>
    %62 = tpu.reciprocal %61 {approx = true} : vector<8x1xf32> -> vector<8x1xf32>
    %63 = arith.mulf %61, %62 : vector<8x1xf32>
    %cst_20 = arith.constant 2.000000e+00 : f32
    %64 = vector.broadcast %cst_20 : f32 to vector<8x1xf32>
    %65 = arith.subf %64, %63 : vector<8x1xf32>
    %66 = arith.mulf %62, %65 : vector<8x1xf32>
    %c0_21 = arith.constant 0 : index
    %c0_22 = arith.constant 0 : index
    %67 = vector.load %arg1[%c0_21, %c0_22] : memref<8x16xf32, #tpu.memory_space<vmem>>, vector<8x16xf32>
    %c0_23 = arith.constant 0 : index
    %c0_24 = arith.constant 0 : index
    %68 = vector.load %arg2[%c0_23, %c0_24] : memref<16x128xf32, #tpu.memory_space<vmem>>, vector<16x128xf32>
    %cst_25 = arith.constant dense<0.000000e+00> : vector<8x128xf32>
    %69 = tpu.matmul %67, %68, %cst_25 {dimension_numbers = #tpu.dot_dimension_numbers<[1], [0], [0], [1], [0, 0, 1, 1], [], []>} : vector<8x16xf32>, vector<16x128xf32>, vector<8x128xf32> -> vector<8x128xf32>
    %cst_26 = arith.constant dense<0.000000e+00> : vector<8x128xf32>
    %70 = tpu.matmul %59, %69, %cst_26 {dimension_numbers = #tpu.dot_dimension_numbers<[1], [0], [0], [1], [0, 0, 1, 1], [], []>} : vector<8x8xf32>, vector<8x128xf32>, vector<8x128xf32> -> vector<8x128xf32>
    %71 = vector.broadcast %66 : vector<8x1xf32> to vector<8x128xf32>
    %72 = arith.mulf %70, %71 : vector<8x128xf32>
    %cst_27 = arith.constant 0.000000e+00 : f32
    %73 = vector.broadcast %cst_27 : f32 to vector<8x128xf32>
    %74 = arith.cmpf ogt, %72, %73 : vector<8x128xf32>
    %cst_28 = arith.constant 0.000000e+00 : f32
    %75 = vector.broadcast %cst_28 : f32 to vector<8x128xf32>
    %76 = arith.minimumf %72, %75 : vector<8x128xf32>
    %77 = math.exp %76 : vector<8x128xf32>
    %cst_29 = arith.constant 1.000000e+00 : f32
    %78 = vector.broadcast %cst_29 : f32 to vector<8x128xf32>
    %79 = arith.subf %77, %78 : vector<8x128xf32>
    %80 = arith.select %74, %72, %79 : vector<8x128xi1>, vector<8x128xf32>
    %c0_30 = arith.constant 0 : index
    %c0_31 = arith.constant 0 : index
    %81 = vector.load %arg6[%c0_30, %c0_31] : memref<8x128xf32, #tpu.memory_space<vmem>>, vector<8x128xf32>
    tpu.vector_store %arg6[%c0_30, %c0_31], %80 {strides = array<i32>} : memref<8x128xf32, #tpu.memory_space<vmem>>, vector<8x128xf32>,
    return
  }
  func.func @transform_0(%arg0: i32) -> (i32, i32) {
    %c0_i32 = arith.constant 0 : i32
    %c0_i32_0 = arith.constant 0 : i32
    %c0_i32_1 = arith.constant 0 : i32
    return %c0_i32, %c0_i32_0 : i32, i32
  }
  func.func @transform_1(%arg0: i32) -> (i32, i32) {
    %c0_i32 = arith.constant 0 : i32
    %c0_i32_0 = arith.constant 0 : i32
    %c0_i32_1 = arith.constant 0 : i32
    return %c0_i32, %c0_i32_0 : i32, i32
  }
  func.func @transform_2(%arg0: i32) -> (i32, i32) {
    %c0_i32 = arith.constant 0 : i32
    %c0_i32_0 = arith.constant 0 : i32
    return %arg0, %c0_i32 : i32, i32
  }
  func.func @transform_3(%arg0: i32) -> (i32, i32) {
    %c0_i32 = arith.constant 0 : i32
    %c0_i32_0 = arith.constant 0 : i32
    return %arg0, %c0_i32 : i32, i32
  }
  func.func @transform_4(%arg0: i32) -> (i32, i32) {
    %c0_i32 = arith.constant 0 : i32
    %c0_i32_0 = arith.constant 0 : i32
    %c0_i32_1 = arith.constant 0 : i32
    return %c0_i32, %c0_i32_0 : i32, i32
  }
  func.func @transform_5(%arg0: i32) -> (i32, i32) {
    %c0_i32 = arith.constant 0 : i32
    %c0_i32_0 = arith.constant 0 : i32
    return %arg0, %c0_i32 : i32, i32
  }
}

</mosaic_0001>

<bundles_post_ra>
// kernel: tpu_custom_call.1
= control target key start
LH: loop header
LB: loop body
LE: loop exit
PB: predicated region body
PF: predicated region fallthrough
CT: control target
= control target key end

     0   :  { %10 = vsyncpa [#allocation3], 0  ;;  %s450_s0 = inlined_call_operand.vmem [shape: f32[8,16], index: 0, kind: input, shape index: {}]   ;;  %s451_s1 = inlined_call_operand.hbm [shape: f32[16,128], index: 1, kind: input, shape index: {}]   ;;  %s452_s2 = inlined_call_operand.vmem [shape: f32[8,8], index: 2, kind: input, shape index: {}]   ;;  %s453_s3 = inlined_call_operand.vmem [shape: f32[8,4], index: 3, kind: input, shape index: {}]   ;;  %s454_s4 = inlined_call_operand.vmem [shape: f32[2,8], index: 4, kind: input, shape index: {}]   ;;  %s455_s5 = inlined_call_operand.hbm [shape: f32[8,128], index: 5, kind: output, shape index: {}]  }
   0x1   :  { %11 = vsyncpa [#allocation4], 0  ;;  %s370_s18 = smov [#allocation2]   ;;  %s322_s22 = scalar_lea.hbm %s451_s1, 256 }
   0x2   :  { %s19_s19 = sshll.u32 %s370_s18, 4  ;;  %p323_p0 = scmp.ne.s32.totalorder %s451_s1, %s322_s22  ;;  %s20_s19 = int_to_ptr.vmem [resolvable:$true] %s19_s19 }
   0x3   :  { %p326_p1 = scmp.lt.u32.totalorder %s322_s22, %s451_s1 }
   0x5   :  { %p328_p2 = pnand %p326_p1, %p323_p0 }
   0x7   :  { %331 = shalt.err (!%p328_p2)
}
   0x8   :  { %s332_s27 = scalar_lea.vmem %s20_s19, 256  ;;  %p337_p4 = scmp.lt.s32.totalorder %s20_s19, %s20_s19 }
   0x9   :  { %p333_p3 = scmp.ne.s32.totalorder %s20_s19, %s332_s27  ;;  %p338_p5 = scmp.lt.s32.totalorder %s332_s27, %s332_s27 }
   0xb   :  { %p339_p6 = por %p338_p5, %p337_p4 }
   0xd   :  { %p340_p7 = pnand %p339_p6, %p333_p3 }
   0xf   :  { %343 = shalt.err (!%p340_p7)
}
  0x10   :  { %s371_s28 = smov 128   ;;  %s372_s29 = smov 8  }
  0x11   :  { %25 = dma.hbm_to_vmem [thread:$0]  %s451_s1, 256, %s20_s19, [#allocation3], %s371_s28, %s371_s28, %s372_s29  }
  0x12   :  { %366 = dma.done.wait [#allocation3], 256  }
  0x13   :  { %367 = vsyncadd [#allocation3], 4294967040  ;;  %v373_v0 = vmov 3   ;;  %v374_v1 = vmov 1   ;;  %v375_v2 = vmov 0.0|0.0   ;;  %vm376_vm0 = vmmov 0  }
  0x14   :  { %313 = vset.pattern.permute.xlu1 %v373_v0  ;;  %311 = vset.pattern.permute.xlu0 %v374_v1  ;;  %v377_v3 = vmov 0.0   ;;  %v48_v4 = vld [vmem:[%s453_s3] sm:$0xff]  ;;  %v104_v6 = vld [vmem:[#allocation2 + $0x8] sm:$0xff]  ;;  %vm105_vm1 = vcmask 130048   ;;  %v378_v9 = vmov 2   ;;  %v379_v10 = vmov 0  }
  0x15   :  { %297 = vmatprep.subr.bf16.mxu0 %v375_v2  ;;  %289 = vmatprep.mubr.msk.f32.mxu0 %vm376_vm0, %v377_v3  ;;  %v103_v5 = vld [vmem:[#allocation2] sm:$0xff]  ;;  %v36_v11 = vlaneseq  ;;  %vm88_vm7 = vcmask 64512  }
  0x16   :  { %292 = vmatprep.subr.mxu1 %v377_v3  ;;  %294 = vmatprep.mubr.msk.f32.mxu1 %vm376_vm0, %v377_v3  ;;  %v298_v7 = vpack.c.bf16 %v104_v6, %v103_v5  ;;  %v102_v8 = vld [vmem:[%s450_s0] sm:$0xff] }
  0x17   :  { %68 = vperm.xlu1 %313, %v48_v4   ;;  %54 = vperm.xlu0 %311, %v48_v4   ;;  %v41_v12 = vand.u32 127, %v36_v11  ;;  %v37_v13 = vshrl.u32 %v36_v11, 7  ;;  %v276_v20 = vld [vmem:[%s454_s4 + $0x1] ss:$0 sm:$0xff]  ;;  %v275_v21 = vld [vmem:[%s454_s4] ss:$0 sm:$0xff] }
  0x18   :  { %299 = vmatpush3.bf16.msra.mxu0 %v298_v7  ;;  %v85_v28 = vld [vmem:[%s452_s2] sm:$0xff]  ;;  %s380_s2 = smov [#allocation5]  }
  0x19   :  { %v44_v14 = vmul.u32 2, %v41_v12  ;;  %v42_v15 = vmul.u32 8, %v37_v13  ;;  %vm86_vm6 = vcmp.gt.f32.partialorder %v85_v28, 0.0  ;;  %s266_s4 = sshll.u32 %s380_s2, 4  ;;  %s267_s4 = int_to_ptr.vmem [resolvable:$true] %s266_s4 }
  0x1a   :  { %s344_s14 = scalar_lea.vmem %s267_s4, 128  ;;  %p349_p9 = scmp.lt.s32.totalorder %s267_s4, %s267_s4 }
  0x1b   :  { %314 = vset.pattern.permute.xlu1 %v378_v9  ;;  %312 = vset.pattern.permute.xlu0 %v379_v10  ;;  %v46_v16 = vadd.s32 1, %v44_v14  ;;  %v43_v19 = vadd.s32 %v42_v15, %v41_v12  ;;  %vm45_vm3 = vcmp.ge.s32.totalorder %v44_v14, 8  ;;  %p345_p8 = scmp.ne.s32.totalorder %s267_s4, %s344_s14  ;;  %p350_p10 = scmp.lt.s32.totalorder %s344_s14, %s344_s14 }
  0x1c   :  { %72 = vperm.xlu1 %314, %v48_v4   ;;  %58 = vperm.xlu0 %312, %v48_v4  }
  0x1d   :  { %290 = vmatmul.mubr.msk.f32.vlgmr.msra.gmra.mrb[0].mxu0 %vm105_vm1, %v102_v8  ;;  %vm47_vm2 = vcmp.ge.s32.totalorder %v46_v16, 8  ;;  %vm51_vm4 = vcmp.lt.s32.totalorder %v43_v19, 32  ;;  %p351_p11 = por %p350_p10, %p349_p9 }
  0x1f   :  { %p352_p12 = pnand %p351_p11, %p345_p8 }
  0x20   :  { %315 = vset.pattern.permute.xlu0 %v378_v9 }
  0x96   :  { %v69_v17 = vpop.permute.xlu1 %68  ;;  %v55_v18 = vpop.permute.xlu0 %54 }
  0x9b   :  { %v73_v22 = vpop.permute.xlu1 %72  ;;  %v59_v23 = vpop.permute.xlu0 %58 }
  0x9c   :  { %v75_v24 = vsel %vm47_vm2, %v69_v17, %v73_v22  ;;  %v61_v25 = vsel %vm45_vm3, %v55_v18, %v59_v23 }
  0x9d   :  { %v80_v26 = vsel %vm51_vm4, %v75_v24, %v276_v20  ;;  %v66_v27 = vsel %vm51_vm4, %v61_v25, %v275_v21 }
  0x9e   :  { %v81_v29 = vadd.f32 %v80_v26, %v66_v27 }
  0xa0   :  { %vm82_vm5 = vcmp.gt.f32.partialorder %v81_v29, 0.0  ;;  %v83_v30 = vmul.f32 0.2, %v81_v29 }
  0xa2   :  { %v84_v31 = vsel %vm82_vm5, %v81_v29, %v83_v30 }
  0xa3   :  { %v87_v32 = vsel %vm86_vm6, %v84_v31, -9e+15 }
  0xa4   :  { %v89_v33 = vsel %vm88_vm7, %v87_v32, -inf }
  0xa5   :  { %90 = vmax.xlane.f32.xlu1 %v89_v33 }
  0xf0   :  { %v175_v34 = vpop.f32.mrb[0].mxu0 }
  0xf1   :  { %v291_v35 = vpop.f32.mrb[1].mxu0  ;;  %293 = vmatpush3.msra.mxu1 %v175_v34 }
 0x132   :  { %v91_v36 = vpop.xlane.xlu1 %90 }
 0x133   :  { %v92_v37 = vsub.f32 %v87_v32, %v91_v36 }
 0x135   :  { %v93_v38 = vmul.f32 1.442695, %v92_v37 }
 0x137   :  { %316 = vpow2.f32 %v93_v38 }
 0x141   :  { %v317_v39 = vpop.eup %316 }
 0x142   :  { %295 = vmatmul.mubr.msk.f32.vlgmr.msra.gmra.mrb[0].mxu1 %vm88_vm7, %v317_v39  ;;  %v95_v40 = vsel %vm88_vm7, %v317_v39, 0.0 }
 0x143   :  { %96 = vadd.xlane.f32.xlu0 %v95_v40 }
 0x1d0   :  { %v97_v41 = vpop.xlane.xlu0 %96 }
 0x1d1   :  { %318 = vrcp.f32 %v97_v41 }
 0x1db   :  { %v319_v42 = vpop.eup %318 }
 0x1dc   :  { %v99_v43 = vmul.f32 %v319_v42, %v97_v41 }
 0x1de   :  { %v100_v44 = vsub.f32 2.0, %v99_v43 }
 0x1e0   :  { %v101_v45 = vmul.f32 %v319_v42, %v100_v44 }
 0x215   :  { %v248_v46 = vpop.f32.mrb[0].mxu1 }
 0x216   :  { %v252_v47 = vmul.f32 %v248_v46, %v101_v45  ;;  %v296_v48 = vpop.f32.mrb[1].mxu1 }
 0x218   :  { %v254_v49 = vmin.f32 %v252_v47, 0.0  ;;  %vm253_vm8 = vcmp.gt.f32.partialorder %v252_v47, 0.0 }
 0x21a   :  { %v255_v50 = vmul.f32 1.442695, %v254_v49 }
 0x21c   :  { %320 = vpow2.f32 %v255_v50 }
 0x226   :  { %v321_v51 = vpop.eup %320 }
 0x227   :  { %v279_v52 = vadd.f32 -1.0, %v321_v51 }
 0x229   :  { %v258_v53 = vsel %vm253_vm8, %v252_v47, %v279_v52 }
 0x22a   :  { %259 = vst [vmem:[#allocation5] sm:$0xff] %v258_v53 }
 0x22b   :  { %355 = shalt.err (!%p352_p12)
}
 0x22c   :  { %s356_s17 = scalar_lea.hbm %s455_s5, 128 }
 0x22d   :  { %p357_p13 = scmp.ne.s32.totalorder %s455_s5, %s356_s17  ;;  %p360_p0 = scmp.lt.u32.totalorder %s356_s17, %s455_s5 }
 0x22f   :  { %p362_p1 = pnand %p360_p0, %p357_p13 }
 0x231   :  { %365 = shalt.err (!%p362_p1)
}
 0x232   :  { %269 = dma.vmem_to_hbm [thread:$0]  %s267_s4, 128, %s455_s5, [#allocation4]  }
 0x233   :  { %368 = dma.done.wait [#allocation4], 128  }
 0x234   :  { %369 = vsyncadd [#allocation4], 4294967168 }
 0x235   :  { %273 = vsyncpa [#allocation3], 1 }
 0x236   :  { %274 = vsyncpa [#allocation4], 1 }

</bundles_post_ra>
